<compile_context>
chip_gen: v6e
topology: v6e:2x2x1
jax: 0.10.0
libtpu: 0.0.40
codegen_flags: <defaults>
</compile_context>

<pallas_src>
import functools

import jax
import jax.numpy as jnp
from jax.experimental import pallas as pl
from jax.experimental.pallas import tpu as pltpu

ALPHA = 0.01

# Row-tile / reduction-tile targets (see header for per-chip tuning notes).
TM_TARGET = 512
TK_TARGET = 1024

# Make XW1/XW2 VMEM-resident if their (double-buffered) footprint is below this.
_XW_RESIDENT_BYTES = 8 * 1024 * 1024


def _round_up(x, m):
    return ((x + m - 1) // m) * m


def _pick_tile(n_pad, target):
    """Largest tile <= target that divides n_pad (n_pad is a multiple of 128)."""
    t = min(target, n_pad)
    while n_pad % t:
        t //= 2
    return max(t, 128)


def _parallel_gnn_kernel(p1_ref, p2_ref, xw1_ref, xw2_ref, b1_ref, b2_ref,
                         o1_ref, o2_ref, acc1_ref, acc2_ref, *, tk, xw_resident):
    """One (row-tile i, reduction-tile k) step of the dense GCN propagation.

    acc1/acc2 are f32 VMEM accumulators resident across the k sweep.  The
    bias (already scaled by (1-alpha)/alpha in the wrapper) is folded into the
    accumulator init, so the finalize is a plain cast + store.
    """
    k = pl.program_id(1)

    @pl.when(k == 0)
    def _():
        acc1_ref[...] = jnp.broadcast_to(b1_ref[...], acc1_ref.shape)
        acc2_ref[...] = jnp.broadcast_to(b2_ref[...], acc2_ref.shape)

    if xw_resident:
        # XW lives fully in VMEM; slice the k-th reduction chunk in-kernel.
        start = pl.multiple_of(k * tk, tk)
        xw1 = xw1_ref[pl.ds(start, tk), :]
        xw2 = xw2_ref[pl.ds(start, tk), :]
    else:
        xw1 = xw1_ref[...]
        xw2 = xw2_ref[...]

    # Pure MXU accumulate: bf16 x bf16 -> f32.
    acc1_ref[...] += jnp.dot(p1_ref[...], xw1, preferred_element_type=jnp.float32)
    acc2_ref[...] += jnp.dot(p2_ref[...], xw2, preferred_element_type=jnp.float32)

    @pl.when(k == pl.num_programs(1) - 1)
    def _():
        o1_ref[...] = acc1_ref[...].astype(o1_ref.dtype)
        o2_ref[...] = acc2_ref[...].astype(o2_ref.dtype)


def gcn_norm_dense(a_st, num_nodes):
    """Dense equivalent of torch_geometric gcn_norm (add_remaining_self_loops).

    a_st[s, t] = 1.0 iff there is an edge s -> t (may be padded; padded rows
    and columns are all-zero and only pick up a normalized self-loop, which is
    harmless since padded feature rows are zero and get sliced away).
    Returns the propagation matrix P[t, s] so that out = P @ X'.
    """
    a = jnp.maximum(a_st, jnp.eye(num_nodes, dtype=a_st.dtype))  # remaining self-loops
    deg = jnp.sum(a, axis=0)                                     # in-degree (targets)
    dinv = jnp.where(deg > 0, 1.0 / jnp.sqrt(deg), 0.0)
    a_hat = dinv[:, None] * a * dinv[None, :]                    # \hat A[s, t]
    return a_hat.T                                               # P[t, s]


def high_adj_dense(a_st, num):
    """Dense equivalent of ParallelGNNBlock.high_adj: nonzero pattern of A^num.

    The A@A products run in bf16 with f32 accumulation (path counts are small
    integers, exact in f32) — full-rate MXU on v5e/v6e/v7x.
    """
    a_bf = a_st.astype(jnp.bfloat16)
    acc = a_st
    for _ in range(num - 1):
        acc = jnp.dot(a_bf, acc.astype(jnp.bfloat16),
                      preferred_element_type=jnp.float32)
    return (acc > 0).astype(a_st.dtype)


def parallel_gnn_block(x, edge_index, w1, b1, w2, b2, alpha=ALPHA):
    """x: [N, F_in] float32, edge_index: [2, E] int32 (row=src, col=dst)."""
    n, fin = x.shape
    fout = w1.shape[1]

    n_pad = _round_up(n, 128)
    fout_pad = _round_up(fout, 128)
    tm = _pick_tile(n_pad, TM_TARGET)
    tk = _pick_tile(n_pad, TK_TARGET)

    # ---- wrapper-side glue (plain JAX / XLA), built directly at padded size --
    src, dst = edge_index[0], edge_index[1]
    a_st = jnp.zeros((n_pad, n_pad), jnp.float32).at[src, dst].set(1.0)
    p1_p = gcn_norm_dense(a_st, n_pad).astype(jnp.bfloat16)
    p2_p = gcn_norm_dense(high_adj_dense(a_st, 2), n_pad).astype(jnp.bfloat16)

    # Fold the (1-alpha)/alpha scales into the tiny weight/bias tensors, then
    # hoist the tiny-K feature transforms out of the kernel (padded output).
    x_p = jnp.pad(x, ((0, n_pad - n), (0, 0)))
    w1_p = jnp.pad((1.0 - alpha) * w1, ((0, 0), (0, fout_pad - fout)))
    w2_p = jnp.pad(alpha * w2, ((0, 0), (0, fout_pad - fout)))
    xw1_p = jnp.dot(x_p, w1_p, preferred_element_type=jnp.float32).astype(jnp.bfloat16)
    xw2_p = jnp.dot(x_p, w2_p, preferred_element_type=jnp.float32).astype(jnp.bfloat16)
    b1_p = jnp.pad((1.0 - alpha) * b1, (0, fout_pad - fout)).reshape(1, fout_pad)
    b2_p = jnp.pad(alpha * b2, (0, fout_pad - fout)).reshape(1, fout_pad)
    b1_p = b1_p.astype(jnp.float32)
    b2_p = b2_p.astype(jnp.float32)

    # ---- choose XW residency and VMEM budget (all static Python) ------------
    xw_db_bytes = 2 * 2 * n_pad * fout_pad * 2          # both XW, double-buffered, bf16
    xw_resident = xw_db_bytes <= _XW_RESIDENT_BYTES

    if xw_resident:
        xw_spec = pl.BlockSpec((n_pad, fout_pad), lambda i, k: (0, 0))
        xw_bytes = xw_db_bytes
    else:
        xw_spec = pl.BlockSpec((tk, fout_pad), lambda i, k: (k, 0))
        xw_bytes = 2 * 2 * tk * fout_pad * 2

    vmem_est = (
        2 * 2 * tm * tk * 2            # P1/P2 tiles, double-buffered bf16
        + xw_bytes
        + 2 * 2 * tm * fout_pad * 4    # outputs, double-buffered f32
        + 2 * tm * fout_pad * 4        # f32 accumulators
        + 2 * 2 * fout_pad * 4         # biases
    )
    cp_kwargs = dict(dimension_semantics=("parallel", "arbitrary"))
    if vmem_est > 12 * 1024 * 1024:
        # Raise the scoped limit only when needed; cap at 48 MiB so the same
        # config stays valid on v7x (64 MiB physical VMEM per TensorCore).
        cp_kwargs["vmem_limit_bytes"] = min(2 * vmem_est, 48 * 1024 * 1024)

    grid = (n_pad // tm, n_pad // tk)
    kernel = functools.partial(_parallel_gnn_kernel, tk=tk, xw_resident=xw_resident)

    o1, o2 = pl.pallas_call(
        kernel,
        out_shape=(jax.ShapeDtypeStruct((n_pad, fout_pad), jnp.float32),
                   jax.ShapeDtypeStruct((n_pad, fout_pad), jnp.float32)),
        grid_spec=pltpu.PrefetchScalarGridSpec(
            num_scalar_prefetch=0,
            grid=grid,
            in_specs=[
                pl.BlockSpec((tm, tk), lambda i, k: (i, k)),        # P1 tile
                pl.BlockSpec((tm, tk), lambda i, k: (i, k)),        # P2 tile
                xw_spec,                                            # XW1
                xw_spec,                                            # XW2
                pl.BlockSpec((1, fout_pad), lambda i, k: (0, 0)),   # b1 (pre-scaled)
                pl.BlockSpec((1, fout_pad), lambda i, k: (0, 0)),   # b2 (pre-scaled)
            ],
            out_specs=[
                pl.BlockSpec((tm, fout_pad), lambda i, k: (i, 0)),
                pl.BlockSpec((tm, fout_pad), lambda i, k: (i, 0)),
            ],
            scratch_shapes=[
                pltpu.VMEM((tm, fout_pad), jnp.float32),
                pltpu.VMEM((tm, fout_pad), jnp.float32),
            ]),
        compiler_params=pltpu.CompilerParams(**cp_kwargs),
    )(p1_p, p2_p, xw1_p, xw2_p, b1_p, b2_p)

    # Un-pad and concatenate the two halves (matches torch.cat(..., dim=1)).
    return jnp.concatenate([o1[:n, :fout], o2[:n, :fout]], axis=1)


def _reference(x, edge_index, w1, b1, w2, b2, alpha=ALPHA):
    """Pure-JAX f32 reference of the forward pass."""
    n = x.shape[0]
    src, dst = edge_index[0], edge_index[1]
    a_st = jnp.zeros((n, n), jnp.float32).at[src, dst].set(1.0)

    def _norm(a):
        aa = jnp.maximum(a, jnp.eye(n, dtype=a.dtype))
        deg = jnp.sum(aa, axis=0)
        dinv = jnp.where(deg > 0, 1.0 / jnp.sqrt(deg), 0.0)
        return (dinv[:, None] * aa * dinv[None, :]).T

    p1 = _norm(a_st)
    p2 = _norm(((a_st @ a_st) > 0).astype(jnp.float32))
    x1 = p1 @ (x @ w1) + b1
    x2 = p2 @ (x @ w2) + b2
    return jnp.concatenate([(1.0 - alpha) * x1, alpha * x2], axis=1)


if __name__ == "__main__":
    key = jax.random.PRNGKey(0)
    n, fin, fout = 16, 8, 32
    k1, k2, k3, k4, k5 = jax.random.split(key, 5)

    # Node features [N, input_dim]
    x = jax.random.normal(k1, (n, fin), jnp.float32)

    # Undirected ring graph (both directions); covers node indices 0..n-1.
    idx = jnp.arange(n)
    src = jnp.concatenate([idx, (idx + 1) % n])
    dst = jnp.concatenate([(idx + 1) % n, idx])
    edge_index = jnp.stack([src, dst]).astype(jnp.int32)

    # Deterministic GCNConv parameters: glorot-style weights, small biases.
    w1 = jax.random.normal(k2, (fin, fout), jnp.float32) * (1.0 / jnp.sqrt(fin))
    w2 = jax.random.normal(k3, (fin, fout), jnp.float32) * (1.0 / jnp.sqrt(fin))
    b1 = jax.random.normal(k4, (fout,), jnp.float32) * 0.1
    b2 = jax.random.normal(k5, (fout,), jnp.float32) * 0.1

    out = parallel_gnn_block(x, edge_index, w1, b1, w2, b2)
    jax.block_until_ready(out)
    assert out.shape == (n, 2 * fout) and out.dtype == jnp.float32

    # Correctness vs. f32 reference (bf16 operands -> relaxed tolerance).
    ref = _reference(x, edge_index, w1, b1, w2, b2)
    assert jnp.allclose(out, ref, atol=5e-2, rtol=5e-2), (
        float(jnp.max(jnp.abs(out - ref))))
    print("KERNEL_OK")
</pallas_src>

<mosaic_0001>
module attributes {stable_mosaic.version = 11 : i64} {
  func.func @_parallel_gnn_kernel(%arg0: i32, %arg1: i32, %arg2: memref<128x128xbf16, #tpu.memory_space<vmem>>, %arg3: memref<128x128xbf16, #tpu.memory_space<vmem>>, %arg4: memref<128x128xbf16, #tpu.memory_space<vmem>>, %arg5: memref<128x128xbf16, #tpu.memory_space<vmem>>, %arg6: memref<1x128xf32, #tpu.memory_space<vmem>>, %arg7: memref<1x128xf32, #tpu.memory_space<vmem>>, %arg8: memref<128x128xf32, #tpu.memory_space<vmem>>, %arg9: memref<128x128xf32, #tpu.memory_space<vmem>>, %arg10: memref<128x128xf32, #tpu.memory_space<vmem>>, %arg11: memref<128x128xf32, #tpu.memory_space<vmem>>) attributes {dimension_semantics = [#tpu.dimension_semantics<parallel>, #tpu.dimension_semantics<arbitrary>], iteration_bounds = array<i64: 1, 1>, scalar_prefetch = 0 : i64, scratch_operands = 2 : i64, tpu.core_type = #tpu.core_type<tc>, window_params = [{transform_indices = @transform_0, window_bounds = array<i64: 128, 128>}, {transform_indices = @transform_1, window_bounds = array<i64: 128, 128>}, {pipeline_mode = #tpu.pipeline_mode<synchronous>, transform_indices = @transform_2, window_bounds = array<i64: 128, 128>}, {pipeline_mode = #tpu.pipeline_mode<synchronous>, transform_indices = @transform_3, window_bounds = array<i64: 128, 128>}, {pipeline_mode = #tpu.pipeline_mode<synchronous>, transform_indices = @transform_4, window_bounds = array<i64: 1, 128>}, {pipeline_mode = #tpu.pipeline_mode<synchronous>, transform_indices = @transform_5, window_bounds = array<i64: 1, 128>}, {transform_indices = @transform_6, window_bounds = array<i64: 128, 128>}, {transform_indices = @transform_7, window_bounds = array<i64: 128, 128>}]} {
    %c0_i32 = arith.constant 0 : i32
    %0 = arith.cmpi eq, %arg1, %c0_i32 : i32
    %1 = arith.extui %0 : i1 to i32
    %c0_i32_0 = arith.constant 0 : i32
    %2 = arith.cmpi ne, %1, %c0_i32_0 : i32
    scf.if %2 {
      %c0_17 = arith.constant 0 : index
      %c0_18 = arith.constant 0 : index
      %22 = vector.load %arg6[%c0_17, %c0_18] : memref<1x128xf32, #tpu.memory_space<vmem>>, vector<1x128xf32>
      %23 = vector.shape_cast %22 : vector<1x128xf32> to vector<1x128xf32>
      %24 = vector.broadcast %23 : vector<1x128xf32> to vector<128x128xf32>
      %c0_19 = arith.constant 0 : index
      %c0_20 = arith.constant 0 : index
      %25 = vector.load %arg10[%c0_19, %c0_20] : memref<128x128xf32, #tpu.memory_space<vmem>>, vector<128x128xf32>
      tpu.vector_store %arg10[%c0_19, %c0_20], %24 {strides = array<i32>} : memref<128x128xf32, #tpu.memory_space<vmem>>, vector<128x128xf32>,
      %c0_21 = arith.constant 0 : index
      %c0_22 = arith.constant 0 : index
      %26 = vector.load %arg7[%c0_21, %c0_22] : memref<1x128xf32, #tpu.memory_space<vmem>>, vector<1x128xf32>
      %27 = vector.shape_cast %26 : vector<1x128xf32> to vector<1x128xf32>
      %28 = vector.broadcast %27 : vector<1x128xf32> to vector<128x128xf32>
      %c0_23 = arith.constant 0 : index
      %c0_24 = arith.constant 0 : index
      %29 = vector.load %arg11[%c0_23, %c0_24] : memref<128x128xf32, #tpu.memory_space<vmem>>, vector<128x128xf32>
      tpu.vector_store %arg11[%c0_23, %c0_24], %28 {strides = array<i32>} : memref<128x128xf32, #tpu.memory_space<vmem>>, vector<128x128xf32>,
    } else {
    }
    %c128_i32 = arith.constant 128 : i32
    %3 = arith.muli %arg1, %c128_i32 : i32
    %4 = tpu.assume_multiple %3, 128 : i32
    %5 = arith.index_cast %4 : i32 to index
    %c0 = arith.constant 0 : index
    %6 = vector.load %arg4[%5, %c0] : memref<128x128xbf16, #tpu.memory_space<vmem>>, vector<128x128xbf16>
    %7 = arith.index_cast %4 : i32 to index
    %c0_1 = arith.constant 0 : index
    %8 = vector.load %arg5[%7, %c0_1] : memref<128x128xbf16, #tpu.memory_space<vmem>>, vector<128x128xbf16>
    %c0_2 = arith.constant 0 : index
    %c0_3 = arith.constant 0 : index
    %9 = vector.load %arg10[%c0_2, %c0_3] : memref<128x128xf32, #tpu.memory_space<vmem>>, vector<128x128xf32>
    %c0_4 = arith.constant 0 : index
    %c0_5 = arith.constant 0 : index
    %10 = vector.load %arg2[%c0_4, %c0_5] : memref<128x128xbf16, #tpu.memory_space<vmem>>, vector<128x128xbf16>
    %cst = arith.constant dense<0.000000e+00> : vector<128x128xf32>
    %11 = tpu.matmul %10, %6, %cst {dimension_numbers = #tpu.dot_dimension_numbers<[1], [0], [0], [1], [0, 0, 1, 1], [], []>} : vector<128x128xbf16>, vector<128x128xbf16>, vector<128x128xf32> -> vector<128x128xf32>
    %12 = arith.addf %9, %11 : vector<128x128xf32>
    %c0_6 = arith.constant 0 : index
    %c0_7 = arith.constant 0 : index
    %13 = vector.load %arg10[%c0_6, %c0_7] : memref<128x128xf32, #tpu.memory_space<vmem>>, vector<128x128xf32>
    tpu.vector_store %arg10[%c0_6, %c0_7], %12 {strides = array<i32>} : memref<128x128xf32, #tpu.memory_space<vmem>>, vector<128x128xf32>,
    %c0_8 = arith.constant 0 : index
    %c0_9 = arith.constant 0 : index
    %14 = vector.load %arg11[%c0_8, %c0_9] : memref<128x128xf32, #tpu.memory_space<vmem>>, vector<128x128xf32>
    %c0_10 = arith.constant 0 : index
    %c0_11 = arith.constant 0 : index
    %15 = vector.load %arg3[%c0_10, %c0_11] : memref<128x128xbf16, #tpu.memory_space<vmem>>, vector<128x128xbf16>
    %cst_12 = arith.constant dense<0.000000e+00> : vector<128x128xf32>
    %16 = tpu.matmul %15, %8, %cst_12 {dimension_numbers = #tpu.dot_dimension_numbers<[1], [0], [0], [1], [0, 0, 1, 1], [], []>} : vector<128x128xbf16>, vector<128x128xbf16>, vector<128x128xf32> -> vector<128x128xf32>
    %17 = arith.addf %14, %16 : vector<128x128xf32>
    %c0_13 = arith.constant 0 : index
    %c0_14 = arith.constant 0 : index
    %18 = vector.load %arg11[%c0_13, %c0_14] : memref<128x128xf32, #tpu.memory_space<vmem>>, vector<128x128xf32>
    tpu.vector_store %arg11[%c0_13, %c0_14], %17 {strides = array<i32>} : memref<128x128xf32, #tpu.memory_space<vmem>>, vector<128x128xf32>,
    %c0_i32_15 = arith.constant 0 : i32
    %19 = arith.cmpi eq, %arg1, %c0_i32_15 : i32
    %20 = arith.extui %19 : i1 to i32
    %c0_i32_16 = arith.constant 0 : i32
    %21 = arith.cmpi ne, %20, %c0_i32_16 : i32
    scf.if %21 {
      %c0_17 = arith.constant 0 : index
      %c0_18 = arith.constant 0 : index
      %22 = vector.load %arg10[%c0_17, %c0_18] : memref<128x128xf32, #tpu.memory_space<vmem>>, vector<128x128xf32>
      %c0_19 = arith.constant 0 : index
      %c0_20 = arith.constant 0 : index
      %23 = vector.load %arg8[%c0_19, %c0_20] : memref<128x128xf32, #tpu.memory_space<vmem>>, vector<128x128xf32>
      tpu.vector_store %arg8[%c0_19, %c0_20], %22 {strides = array<i32>} : memref<128x128xf32, #tpu.memory_space<vmem>>, vector<128x128xf32>,
      %c0_21 = arith.constant 0 : index
      %c0_22 = arith.constant 0 : index
      %24 = vector.load %arg11[%c0_21, %c0_22] : memref<128x128xf32, #tpu.memory_space<vmem>>, vector<128x128xf32>
      %c0_23 = arith.constant 0 : index
      %c0_24 = arith.constant 0 : index
      %25 = vector.load %arg9[%c0_23, %c0_24] : memref<128x128xf32, #tpu.memory_space<vmem>>, vector<128x128xf32>
      tpu.vector_store %arg9[%c0_23, %c0_24], %24 {strides = array<i32>} : memref<128x128xf32, #tpu.memory_space<vmem>>, vector<128x128xf32>,
    } else {
    }
    return
  }
  func.func @transform_0(%arg0: i32, %arg1: i32) -> (i32, i32) {
    %c0_i32 = arith.constant 0 : i32
    return %arg0, %arg1 : i32, i32
  }
  func.func @transform_1(%arg0: i32, %arg1: i32) -> (i32, i32) {
    %c0_i32 = arith.constant 0 : i32
    return %arg0, %arg1 : i32, i32
  }
  func.func @transform_2(%arg0: i32, %arg1: i32) -> (i32, i32) {
    %c0_i32 = arith.constant 0 : i32
    %c0_i32_0 = arith.constant 0 : i32
    %c0_i32_1 = arith.constant 0 : i32
    return %c0_i32, %c0_i32_0 : i32, i32
  }
  func.func @transform_3(%arg0: i32, %arg1: i32) -> (i32, i32) {
    %c0_i32 = arith.constant 0 : i32
    %c0_i32_0 = arith.constant 0 : i32
    %c0_i32_1 = arith.constant 0 : i32
    return %c0_i32, %c0_i32_0 : i32, i32
  }
  func.func @transform_4(%arg0: i32, %arg1: i32) -> (i32, i32) {
    %c0_i32 = arith.constant 0 : i32
    %c0_i32_0 = arith.constant 0 : i32
    %c0_i32_1 = arith.constant 0 : i32
    return %c0_i32, %c0_i32_0 : i32, i32
  }
  func.func @transform_5(%arg0: i32, %arg1: i32) -> (i32, i32) {
    %c0_i32 = arith.constant 0 : i32
    %c0_i32_0 = arith.constant 0 : i32
    %c0_i32_1 = arith.constant 0 : i32
    return %c0_i32, %c0_i32_0 : i32, i32
  }
  func.func @transform_6(%arg0: i32, %arg1: i32) -> (i32, i32) {
    %c0_i32 = arith.constant 0 : i32
    %c0_i32_0 = arith.constant 0 : i32
    return %arg0, %c0_i32 : i32, i32
  }
  func.func @transform_7(%arg0: i32, %arg1: i32) -> (i32, i32) {
    %c0_i32 = arith.constant 0 : i32
    %c0_i32_0 = arith.constant 0 : i32
    return %arg0, %c0_i32 : i32, i32
  }
}

</mosaic_0001>

<bundles_post_ra>
// kernel: tpu_custom_call.1
= control target key start
LH: loop header
LB: loop body
LE: loop exit
PB: predicated region body
PF: predicated region fallthrough
CT: control target
= control target key end

     0   :  { %13 = vsyncpa [#allocation5], 0  ;;  %s1216_s0 = inlined_call_operand.hbm [shape: bf16[128,128], index: 0, kind: input, shape index: {}]   ;;  %s1217_s1 = inlined_call_operand.hbm [shape: bf16[128,128], index: 1, kind: input, shape index: {}]   ;;  %s1218_s2 = inlined_call_operand.hbm [shape: bf16[128,128], index: 2, kind: input, shape index: {}]   ;;  %s1219_s3 = inlined_call_operand.hbm [shape: bf16[128,128], index: 3, kind: input, shape index: {}]   ;;  %s1220_s4 = inlined_call_operand.vmem [shape: f32[1,128], index: 4, kind: input, shape index: {}]   ;;  %s1221_s5 = inlined_call_operand.vmem [shape: f32[1,128], index: 5, kind: input, shape index: {}]   ;;  %s1222_s6 = inlined_call_operand.hbm [shape: f32[128,128], index: 6, kind: output, shape index: {0}]   ;;  %s1223_s7 = inlined_call_operand.hbm [shape: f32[128,128], index: 7, kind: output, shape index: {1}]  }
   0x1   :  { %14 = vsyncpa [#allocation8], 0 }
   0x2   :  { %15 = vsyncpa [#allocation11], 0 }
   0x3   :  { %16 = vsyncpa [#allocation6], 0 }
   0x4   :  { %17 = vsyncpa [#allocation14], 0  ;;  %s1094_s24 = smov [#allocation7]   ;;  %s1095_s26 = smov [#allocation4]  }
   0x5   :  { %s35_s25 = sshll.u32 %s1094_s24, 4  ;;  %s23_s27 = sshll.u32 %s1095_s26, 4  ;;  %s36_s25 = int_to_ptr.vmem [resolvable:$true] %s35_s25  ;;  %s24_s27 = int_to_ptr.vmem [resolvable:$true] %s23_s27 }
   0x6   :  { %s972_s28 = scalar_lea.vmem %s36_s25, 1024  ;;  %p977_p1 = scmp.lt.s32.totalorder %s36_s25, %s36_s25 }
   0x7   :  { %p973_p0 = scmp.ne.s32.totalorder %s36_s25, %s972_s28  ;;  %p978_p2 = scmp.lt.s32.totalorder %s972_s28, %s972_s28 }
   0x9   :  { %p979_p3 = por %p978_p2, %p977_p1 }
   0xb   :  { %p980_p4 = pnand %p979_p3, %p973_p0 }
   0xd   :  { %983 = shalt.err (!%p980_p4)
}
   0xe   :  { %s1096_s29 = smov 64   ;;  %s1097_s30 = smov 4  }
   0xf   :  { %41 = dma.hbm_to_vmem [thread:$0]  %s1217_s1, 1024, %s36_s25, [#allocation8], %s1096_s29, %s1096_s29, %s1097_s30  }
  0x10   :  { %s992_s10 = scalar_lea.vmem %s24_s27, 1024  ;;  %p997_p6 = scmp.lt.s32.totalorder %s24_s27, %s24_s27 }
  0x11   :  { %p993_p5 = scmp.ne.s32.totalorder %s24_s27, %s992_s10  ;;  %p998_p7 = scmp.lt.s32.totalorder %s992_s10, %s992_s10 }
  0x13   :  { %p999_p8 = por %p998_p7, %p997_p6 }
  0x15   :  { %p1000_p9 = pnand %p999_p8, %p993_p5 }
  0x17   :  { %1003 = shalt.err (!%p1000_p9)
}
  0x18   :  { %29 = dma.hbm_to_vmem [thread:$0]  %s1216_s0, 1024, %s24_s27, [#allocation5], %s1096_s29, %s1096_s29, %s1097_s30  }
  0x19   :  { %s1098_s13 = smov [#allocation9]   ;;  %s1099_s15 = smov [#allocation10]  }
  0x1a   :  { %s47_s14 = sshll.u32 %s1098_s13, 4  ;;  %s59_s16 = sshll.u32 %s1099_s15, 4  ;;  %s48_s14 = int_to_ptr.vmem [resolvable:$true] %s47_s14  ;;  %s60_s16 = int_to_ptr.vmem [resolvable:$true] %s59_s16 }
  0x1b   :  { %s1012_s1 = scalar_lea.vmem %s48_s14, 1024  ;;  %p1017_p11 = scmp.lt.s32.totalorder %s48_s14, %s48_s14 }
  0x1c   :  { %p1013_p10 = scmp.ne.s32.totalorder %s48_s14, %s1012_s1  ;;  %p1018_p12 = scmp.lt.s32.totalorder %s1012_s1, %s1012_s1 }
  0x1e   :  { %p1019_p13 = por %p1018_p12, %p1017_p11 }
  0x20   :  { %p1020_p0 = pnand %p1019_p13, %p1013_p10 }
  0x22   :  { %1023 = shalt.err (!%p1020_p0)
}
  0x23   :  { %53 = dma.hbm_to_vmem [thread:$0]  %s1218_s2, 1024, %s48_s14, [#allocation8], %s1096_s29, %s1096_s29, %s1097_s30  }
  0x24   :  { %s1032_s0 = scalar_lea.vmem %s60_s16, 1024  ;;  %p1037_p2 = scmp.lt.s32.totalorder %s60_s16, %s60_s16 }
  0x25   :  { %p1033_p1 = scmp.ne.s32.totalorder %s60_s16, %s1032_s0  ;;  %p1038_p3 = scmp.lt.s32.totalorder %s1032_s0, %s1032_s0 }
  0x27   :  { %p1039_p4 = por %p1038_p3, %p1037_p2 }
  0x29   :  { %p1040_p5 = pnand %p1039_p4, %p1033_p1 }
  0x2b   :  { %1043 = shalt.err (!%p1040_p5)
}
  0x2c   :  { %65 = dma.hbm_to_vmem [thread:$0]  %s1219_s3, 1024, %s60_s16, [#allocation11], %s1096_s29, %s1096_s29, %s1097_s30  }
  0x2d   :  { %1084 = dma.done.wait [#allocation5], 1024  }
  0x2e   :  { %1085 = vsyncadd [#allocation5], 4294966272 }
  0x2f   :  { %1086 = dma.done.wait [#allocation8], 2048  }
  0x30   :  { %1087 = vsyncadd [#allocation8], 4294965248 }
  0x31   :  { %1088 = dma.done.wait [#allocation11], 1024  }
  0x32   :  { %1089 = vsyncadd [#allocation11], 4294966272  ;;  %v932_v0 = vld [vmem:[#allocation9 + $0x38] sm:$0xff]   ;;  %v934_v2 = vld [vmem:[#allocation9 + $0x30] sm:$0xff]   ;;  %s1101_s23 = smov [#allocation13]  }
  0x33   :  { %v933_v1 = vld [vmem:[#allocation10 + $0x38] sm:$0xff]   ;;  %858 = vmatprep.subr.bf16.mxu0 %v932_v0  ;;  %v935_v3 = vld [vmem:[#allocation10 + $0x30] sm:$0xff]   ;;  %v936_v4 = vld [vmem:[#allocation9 + $0x28] sm:$0xff]   ;;  %s770_s24 = sshll.u32 %s1101_s23, 4  ;;  %s771_s24 = int_to_ptr.vmem [resolvable:$true] %s770_s24 }
  0x34   :  { %890 = vmatprep.subr.bf16.mxu1 %v933_v1  ;;  %859 = vmatpush3.bf16.msra.mxu0 %v932_v0  ;;  %v937_v5 = vld [vmem:[#allocation10 + $0x28] sm:$0xff]   ;;  %v938_v6 = vld [vmem:[#allocation9 + $0x20] sm:$0xff]   ;;  %v940_v8 = vld [vmem:[#allocation9 + $0x18] sm:$0xff]  }
  0x35   :  { %891 = vmatpush3.bf16.msra.mxu1 %v933_v1  ;;  %860 = vmatprep.subr.bf16.mxu0 %v934_v2  ;;  %v939_v7 = vld [vmem:[#allocation10 + $0x20] sm:$0xff]   ;;  %v941_v9 = vld [vmem:[#allocation10 + $0x18] sm:$0xff]   ;;  %v942_v10 = vld [vmem:[#allocation9 + $0x10] sm:$0xff]  }
  0x36   :  { %892 = vmatprep.subr.bf16.mxu1 %v935_v3  ;;  %v943_v11 = vld [vmem:[#allocation10 + $0x10] sm:$0xff]   ;;  %v948_v12 = vld [vmem:[#allocation4] sm:$0xff]   ;;  %v944_v14 = vld [vmem:[#allocation9 + $0x8] sm:$0xff]  }
  0x37   :  { %v949_v13 = vld [vmem:[#allocation7] sm:$0xff]   ;;  %874 = vmatprep.mubr.bf16.mxu0 %v948_v12  ;;  %v945_v15 = vld [vmem:[#allocation10 + $0x8] sm:$0xff]   ;;  %v952_v20 = vld [vmem:[#allocation4 + $0x10] sm:$0xff]  }
  0x38   :  { %861 = vmatpush3.bf16.msra.mxu0 %v934_v2  ;;  %906 = vmatprep.mubr.bf16.mxu1 %v949_v13  ;;  %v946_v16 = vld [vmem:[#allocation9] sm:$0xff]   ;;  %v950_v18 = vld [vmem:[#allocation4 + $0x8] sm:$0xff]   ;;  %v953_v21 = vld [vmem:[#allocation7 + $0x10] sm:$0xff]  }
  0x39   :  { %893 = vmatpush3.bf16.msra.mxu1 %v935_v3  ;;  %862 = vmatprep.subr.bf16.mxu0 %v936_v4  ;;  %v947_v17 = vld [vmem:[#allocation10] sm:$0xff]   ;;  %v951_v19 = vld [vmem:[#allocation7 + $0x8] sm:$0xff]   ;;  %v954_v22 = vld [vmem:[#allocation4 + $0x18] sm:$0xff]  }
  0x3a   :  { %894 = vmatprep.subr.bf16.mxu1 %v937_v5  ;;  %v955_v23 = vld [vmem:[#allocation7 + $0x18] sm:$0xff]   ;;  %v956_v24 = vld [vmem:[#allocation4 + $0x20] sm:$0xff]   ;;  %v958_v26 = vld [vmem:[#allocation4 + $0x28] sm:$0xff]  }
  0x3b   :  { %v957_v25 = vld [vmem:[#allocation7 + $0x20] sm:$0xff]   ;;  %v959_v27 = vld [vmem:[#allocation7 + $0x28] sm:$0xff]   ;;  %v960_v28 = vld [vmem:[#allocation4 + $0x30] sm:$0xff]  }
  0x3c   :  { %863 = vmatpush3.bf16.msra.mxu0 %v936_v4  ;;  %v961_v29 = vld [vmem:[#allocation7 + $0x30] sm:$0xff]   ;;  %v962_v30 = vld [vmem:[#allocation4 + $0x38] sm:$0xff]   ;;  %v1171_v32 = vld [vmem:[%s1220_s4] ss:$0 sm:$0xff]  ;;  %s1100_s4 = smov [#allocation12]  }
  0x3d   :  { %895 = vmatpush3.bf16.msra.mxu1 %v937_v5  ;;  %864 = vmatprep.subr.bf16.mxu0 %v938_v6  ;;  %v963_v31 = vld [vmem:[#allocation7 + $0x38] sm:$0xff]   ;;  %v1176_v33 = vld [vmem:[%s1221_s5] ss:$0 sm:$0xff]  ;;  %s758_s5 = sshll.u32 %s1100_s4, 4  ;;  %s759_s5 = int_to_ptr.vmem [resolvable:$true] %s758_s5 }
  0x3e   :  { %896 = vmatprep.subr.bf16.mxu1 %v939_v7  ;;  %s1044_s25 = scalar_lea.vmem %s759_s5, 2048  ;;  %p1049_p7 = scmp.lt.s32.totalorder %s759_s5, %s759_s5 }
  0x3f   :  { %p1045_p6 = scmp.ne.s32.totalorder %s759_s5, %s1044_s25  ;;  %p1050_p8 = scmp.lt.s32.totalorder %s1044_s25, %s1044_s25 }
  0x40   :  { %865 = vmatpush3.bf16.msra.mxu0 %v938_v6 }
  0x41   :  { %897 = vmatpush3.bf16.msra.mxu1 %v939_v7  ;;  %866 = vmatprep.subr.bf16.mxu0 %v940_v8  ;;  %p1051_p9 = por %p1050_p8, %p1049_p7 }
  0x42   :  { %898 = vmatprep.subr.bf16.mxu1 %v941_v9 }
  0x43   :  { %p1052_p10 = pnand %p1051_p9, %p1045_p6 }
  0x44   :  { %867 = vmatpush3.bf16.msra.mxu0 %v940_v8 }
  0x45   :  { %899 = vmatpush3.bf16.msra.mxu1 %v941_v9  ;;  %868 = vmatprep.subr.bf16.mxu0 %v942_v10 }
  0x46   :  { %900 = vmatprep.subr.bf16.mxu1 %v943_v11 }
  0x48   :  { %869 = vmatpush3.bf16.msra.mxu0 %v942_v10 }
  0x49   :  { %901 = vmatpush3.bf16.msra.mxu1 %v943_v11  ;;  %870 = vmatprep.subr.bf16.mxu0 %v944_v14 }
  0x4a   :  { %902 = vmatprep.subr.bf16.mxu1 %v945_v15 }
  0x4c   :  { %871 = vmatpush3.bf16.msra.mxu0 %v944_v14 }
  0x4d   :  { %903 = vmatpush3.bf16.msra.mxu1 %v945_v15  ;;  %872 = vmatprep.subr.bf16.mxu0 %v946_v16 }
  0x4e   :  { %904 = vmatprep.subr.bf16.mxu1 %v947_v17 }
  0x50   :  { %873 = vmatpush3.bf16.msra.mxu0 %v946_v16 }
  0x51   :  { %905 = vmatpush3.bf16.msra.mxu1 %v947_v17 }
  0x53   :  { %875 = vmatmul.mubr.bf16.vlgmr.msra.gmra.mxu0 %v950_v18 }
  0x54   :  { %907 = vmatmul.mubr.bf16.vlgmr.msra.gmra.mxu1 %v951_v19  ;;  %878 = vmatprep.mubr.bf16.mxu0 %v952_v20 }
  0x55   :  { %910 = vmatprep.mubr.bf16.mxu1 %v953_v21 }
  0x5b   :  { %879 = vmatmul.mubr.bf16.gmra.mxu0 %v954_v22 }
  0x5c   :  { %911 = vmatmul.mubr.bf16.gmra.mxu1 %v955_v23  ;;  %882 = vmatprep.mubr.bf16.mxu0 %v956_v24 }
  0x5d   :  { %914 = vmatprep.mubr.bf16.mxu1 %v957_v25 }
  0x63   :  { %883 = vmatmul.mubr.bf16.gmra.mxu0 %v958_v26 }
  0x64   :  { %915 = vmatmul.mubr.bf16.gmra.mxu1 %v959_v27  ;;  %886 = vmatprep.mubr.bf16.mxu0 %v960_v28 }
  0x65   :  { %918 = vmatprep.mubr.bf16.mxu1 %v961_v29 }
  0x6b   :  { %887 = vmatmul.mubr.bf16.gmra.mxu0 %v962_v30 }
  0x6c   :  { %919 = vmatmul.mubr.bf16.gmra.mxu1 %v963_v31 }
 0x113   :  { %v876_v34 = vpop.f32.mrf.mxu0 }
 0x114   :  { %v399_v35 = vadd.f32 %v876_v34, %v1171_v32  ;;  %v908_v36 = vpop.f32.mrf.mxu1 }
 0x115   :  { %v656_v37 = vadd.f32 %v908_v36, %v1176_v33  ;;  %v334_v38 = vpop.f32.mrf.mxu0 }
 0x116   :  { %707 = vst [vmem:[#allocation12 + $0x10] sm:$0xff] %v399_v35  ;;  %v397_v39 = vadd.f32 %v1171_v32, %v334_v38  ;;  %v591_v40 = vpop.f32.mrf.mxu1 }
 0x117   :  { %739 = vst [vmem:[#allocation13 + $0x10] sm:$0xff] %v656_v37  ;;  %v654_v41 = vadd.f32 %v1176_v33, %v591_v40  ;;  %v877_v42 = vpop.f32.mrf.mxu0 }
 0x118   :  { %705 = vst [vmem:[#allocation12] sm:$0xff] %v397_v39  ;;  %v400_v43 = vadd.f32 %v877_v42, %v1171_v32  ;;  %v909_v44 = vpop.f32.mrf.mxu1 }
 0x119   :  { %737 = vst [vmem:[#allocation13] sm:$0xff] %v654_v41  ;;  %v657_v45 = vadd.f32 %v909_v44, %v1176_v33  ;;  %v337_v46 = vpop.f32.mrf.mxu0 }
 0x11a   :  { %708 = vst [vmem:[#allocation12 + $0x18] sm:$0xff] %v400_v43  ;;  %v398_v47 = vadd.f32 %v1171_v32, %v337_v46  ;;  %v594_v48 = vpop.f32.mrf.mxu1 }
 0x11b   :  { %740 = vst [vmem:[#allocation13 + $0x18] sm:$0xff] %v657_v45  ;;  %v655_v49 = vadd.f32 %v1176_v33, %v594_v48  ;;  %v880_v50 = vpop.f32.mrf.mxu0 }
 0x11c   :  { %706 = vst [vmem:[#allocation12 + $0x8] sm:$0xff] %v398_v47  ;;  %v403_v51 = vadd.f32 %v880_v50, %v1171_v32  ;;  %v912_v52 = vpop.f32.mrf.mxu1 }
 0x11d   :  { %738 = vst [vmem:[#allocation13 + $0x8] sm:$0xff] %v655_v49  ;;  %v660_v53 = vadd.f32 %v912_v52, %v1176_v33  ;;  %v350_v54 = vpop.f32.mrf.mxu0 }
 0x11e   :  { %711 = vst [vmem:[#allocation12 + $0x30] sm:$0xff] %v403_v51  ;;  %v401_v55 = vadd.f32 %v1171_v32, %v350_v54  ;;  %v607_v56 = vpop.f32.mrf.mxu1 }
 0x11f   :  { %743 = vst [vmem:[#allocation13 + $0x30] sm:$0xff] %v660_v53  ;;  %v658_v57 = vadd.f32 %v1176_v33, %v607_v56  ;;  %v881_v58 = vpop.f32.mrf.mxu0 }
 0x120   :  { %709 = vst [vmem:[#allocation12 + $0x20] sm:$0xff] %v401_v55  ;;  %v404_v59 = vadd.f32 %v881_v58, %v1171_v32  ;;  %v913_v60 = vpop.f32.mrf.mxu1 }
 0x121   :  { %741 = vst [vmem:[#allocation13 + $0x20] sm:$0xff] %v658_v57  ;;  %v661_v61 = vadd.f32 %v913_v60, %v1176_v33  ;;  %v353_v62 = vpop.f32.mrf.mxu0 }
 0x122   :  { %712 = vst [vmem:[#allocation12 + $0x38] sm:$0xff] %v404_v59  ;;  %v402_v63 = vadd.f32 %v1171_v32, %v353_v62  ;;  %v610_v0 = vpop.f32.mrf.mxu1 }
 0x123   :  { %744 = vst [vmem:[#allocation13 + $0x38] sm:$0xff] %v661_v61  ;;  %v659_v1 = vadd.f32 %v1176_v33, %v610_v0  ;;  %v884_v2 = vpop.f32.mrf.mxu0 }
 0x124   :  { %710 = vst [vmem:[#allocation12 + $0x28] sm:$0xff] %v402_v63  ;;  %v407_v3 = vadd.f32 %v884_v2, %v1171_v32  ;;  %v916_v4 = vpop.f32.mrf.mxu1 }
 0x125   :  { %742 = vst [vmem:[#allocation13 + $0x28] sm:$0xff] %v659_v1  ;;  %v664_v5 = vadd.f32 %v916_v4, %v1176_v33  ;;  %v366_v6 = vpop.f32.mrf.mxu0 }
 0x126   :  { %715 = vst [vmem:[#allocation12 + $0x50] sm:$0xff] %v407_v3  ;;  %v405_v7 = vadd.f32 %v1171_v32, %v366_v6  ;;  %v623_v8 = vpop.f32.mrf.mxu1 }
 0x127   :  { %747 = vst [vmem:[#allocation13 + $0x50] sm:$0xff] %v664_v5  ;;  %v662_v9 = vadd.f32 %v1176_v33, %v623_v8  ;;  %v885_v10 = vpop.f32.mrf.mxu0 }
 0x128   :  { %713 = vst [vmem:[#allocation12 + $0x40] sm:$0xff] %v405_v7  ;;  %v408_v11 = vadd.f32 %v885_v10, %v1171_v32  ;;  %v917_v12 = vpop.f32.mrf.mxu1 }
 0x129   :  { %745 = vst [vmem:[#allocation13 + $0x40] sm:$0xff] %v662_v9  ;;  %v665_v13 = vadd.f32 %v917_v12, %v1176_v33  ;;  %v369_v14 = vpop.f32.mrf.mxu0 }
 0x12a   :  { %716 = vst [vmem:[#allocation12 + $0x58] sm:$0xff] %v408_v11  ;;  %v406_v15 = vadd.f32 %v1171_v32, %v369_v14  ;;  %v626_v16 = vpop.f32.mrf.mxu1 }
 0x12b   :  { %748 = vst [vmem:[#allocation13 + $0x58] sm:$0xff] %v665_v13  ;;  %v663_v17 = vadd.f32 %v1176_v33, %v626_v16  ;;  %v888_v18 = vpop.f32.mrf.mxu0 }
 0x12c   :  { %714 = vst [vmem:[#allocation12 + $0x48] sm:$0xff] %v406_v15  ;;  %v411_v19 = vadd.f32 %v888_v18, %v1171_v32  ;;  %v920_v20 = vpop.f32.mrf.mxu1 }
 0x12d   :  { %746 = vst [vmem:[#allocation13 + $0x48] sm:$0xff] %v663_v17  ;;  %v668_v21 = vadd.f32 %v920_v20, %v1176_v33  ;;  %v382_v22 = vpop.f32.mrf.mxu0 }
 0x12e   :  { %719 = vst [vmem:[#allocation12 + $0x70] sm:$0xff] %v411_v19  ;;  %v409_v23 = vadd.f32 %v1171_v32, %v382_v22  ;;  %v639_v24 = vpop.f32.mrf.mxu1 }
 0x12f   :  { %751 = vst [vmem:[#allocation13 + $0x70] sm:$0xff] %v668_v21  ;;  %v666_v25 = vadd.f32 %v1176_v33, %v639_v24  ;;  %v889_v26 = vpop.f32.mrf.mxu0 }
 0x130   :  { %717 = vst [vmem:[#allocation12 + $0x60] sm:$0xff] %v409_v23  ;;  %v412_v27 = vadd.f32 %v889_v26, %v1171_v32  ;;  %v921_v28 = vpop.f32.mrf.mxu1 }
 0x131   :  { %749 = vst [vmem:[#allocation13 + $0x60] sm:$0xff] %v666_v25  ;;  %v669_v29 = vadd.f32 %v921_v28, %v1176_v33  ;;  %v385_v30 = vpop.f32.mrf.mxu0 }
 0x132   :  { %720 = vst [vmem:[#allocation12 + $0x78] sm:$0xff] %v412_v27  ;;  %v410_v31 = vadd.f32 %v1171_v32, %v385_v30  ;;  %v642_v34 = vpop.f32.mrf.mxu1 }
 0x133   :  { %752 = vst [vmem:[#allocation13 + $0x78] sm:$0xff] %v669_v29  ;;  %v667_v35 = vadd.f32 %v1176_v33, %v642_v34 }
 0x134   :  { %718 = vst [vmem:[#allocation12 + $0x68] sm:$0xff] %v410_v31 }
 0x135   :  { %750 = vst [vmem:[#allocation13 + $0x68] sm:$0xff] %v667_v35 }
 0x136   :  { %1055 = shalt.err (!%p1052_p10)
}
 0x137   :  { %s1102_s26 = smov 128   ;;  %s1103_s27 = smov 8  }
 0x138   :  { %764 = dma.vmem_to_hbm [thread:$0]  %s759_s5, 2048, %s1222_s6, [#allocation6], %s1102_s26, %s1102_s26, %s1103_s27  }
 0x139   :  { %s1064_s30 = scalar_lea.vmem %s771_s24, 2048  ;;  %p1069_p12 = scmp.lt.s32.totalorder %s771_s24, %s771_s24 }
 0x13a   :  { %p1065_p11 = scmp.ne.s32.totalorder %s771_s24, %s1064_s30  ;;  %p1070_p13 = scmp.lt.s32.totalorder %s1064_s30, %s1064_s30 }
 0x13c   :  { %p1071_p0 = por %p1070_p13, %p1069_p12 }
 0x13e   :  { %p1072_p1 = pnand %p1071_p0, %p1065_p11 }
 0x140   :  { %1075 = shalt.err (!%p1072_p1)
}
 0x141   :  { %776 = dma.vmem_to_hbm [thread:$0]  %s771_s24, 2048, %s1223_s7, [#allocation14], %s1102_s26, %s1102_s26, %s1103_s27  }
 0x142   :  { %1090 = dma.done.wait [#allocation6], 2048  }
 0x143   :  { %1091 = vsyncadd [#allocation6], 4294965248 }
 0x144   :  { %1092 = dma.done.wait [#allocation14], 2048  }
 0x145   :  { %1093 = vsyncadd [#allocation14], 4294965248 }
 0x146   :  { %783 = vsyncpa [#allocation5], 1 }
 0x147   :  { %784 = vsyncpa [#allocation8], 1 }
 0x148   :  { %785 = vsyncpa [#allocation11], 1 }
 0x149   :  { %786 = vsyncpa [#allocation6], 1 }
 0x14a   :  { %787 = vsyncpa [#allocation14], 1 }

</bundles_post_ra>
